<compile_context>
chip_gen: v7x
topology: tpu7x:2x2x1
jax: 0.10.0
libtpu: 0.0.40
codegen_flags: <defaults>
</compile_context>

<pallas_src>
import math
import functools

import numpy as np
import jax
import jax.numpy as jnp
from jax.experimental import pallas as pl
from jax.experimental.pallas import tpu as pltpu


def _norm_pool_kernel(x_ref, p_ref, o_ref):
    # x_ref: (TR, G*kh*W)   TR row-bands; each lane-row = G bands of kh*W elems
    # p_ref: (G*kh*W, G*Wo) constant 0/1 window-selection matrix (bf16, exact)
    # o_ref: (TR, G*Wo)
    x = x_ref[...].astype(jnp.float32)
    x2 = x * x
    # 3-term hi/lo split of x^2 -> three single-pass bf16 MXU matmuls with
    # f32 accumulation.  P is exact in bf16, and zero products contribute
    # exactly 0, so the result keeps ~f32 accuracy (rel. err ~2^-27) at half
    # the MXU passes of precision=HIGHEST.
    hi = x2.astype(jnp.bfloat16)
    r1 = x2 - hi.astype(jnp.float32)
    lo = r1.astype(jnp.bfloat16)
    lo2 = (r1 - lo.astype(jnp.float32)).astype(jnp.bfloat16)
    p = p_ref[...]
    ssq = jnp.dot(hi, p, preferred_element_type=jnp.float32)
    ssq = ssq + jnp.dot(lo, p, preferred_element_type=jnp.float32)
    ssq = ssq + jnp.dot(lo2, p, preferred_element_type=jnp.float32)
    # coef * sqrt(mean(x^2)) == sqrt(sum(x^2)) since coef = sqrt(kh*kw).
    # maximum(.,0) guards sqrt against a tiny negative from split cancellation.
    o_ref[...] = jnp.sqrt(jnp.maximum(ssq, 0.0)).astype(o_ref.dtype)


def _tpu_generation():
    try:
        kind = jax.devices()[0].device_kind.lower()
    except Exception:
        kind = ""
    if "v5" in kind or "v4" in kind:
        return "v5"
    if "v7" in kind:
        return "v7"
    return "v6"  # v6e or unknown


@functools.partial(jax.jit, static_argnames=("kernel_size", "stride"))
def norm_pooling_2d(x, kernel_size, stride=None):
    """sqrt(kh*kw) * sqrt(AvgPool2d(kernel_size)(x*x)), x in NCHW."""
    kh, kw = kernel_size
    sh, sw = (kh, kw) if stride is None else stride
    # TODO(synk): overlapping windows (stride != kernel_size), padding and
    # ceil_mode need a different window-extraction path; the reference module
    # uses AvgPool2d's default stride == kernel_size.
    assert (sh, sw) == (kh, kw), "only default stride (= kernel_size) supported"

    B, C, H, W = x.shape
    assert H % kh == 0 and W % kw == 0, "no padding / ceil_mode support"
    Ho, Wo = H // kh, W // kw
    R = B * C * Ho            # number of (kh x W) row bands, contiguous in HBM
    M = kh * W                # elements per row band

    gen = _tpu_generation()
    # Per-generation knobs:
    #  - OUT_LANE_CAP: 128-wide MXU on v5e; 256-wide MXU on v6e/v7x.
    #  - STEP_BYTES: per-step HBM target to amortize ~0.35us/step overhead.
    #  - VMEM budgets: v7x has only 64 MiB physical VMEM (v5e/v6e: 128 MiB).
    if gen == "v5":
        OUT_LANE_CAP, STEP_BYTES, VMEM_BUDGET, VMEM_CAP = 128, 2 << 20, 80 << 20, 100 << 20
    elif gen == "v7":
        OUT_LANE_CAP, STEP_BYTES, VMEM_BUDGET, VMEM_CAP = 256, 8 << 20, 40 << 20, 48 << 20
    else:  # v6e / unknown
        OUT_LANE_CAP, STEP_BYTES, VMEM_BUDGET, VMEM_CAP = 256, 6 << 20, 80 << 20, 100 << 20
    LANE_CAP = 1024

    # Lane-packing factor G: put G consecutive row bands on one lane-row.
    #  - G must divide R (pure reshape, no padding copy)
    #  - G*M  <= LANE_CAP, G*Wo <= OUT_LANE_CAP, R//G >= 8 when possible
    #  - prefer G*Wo a multiple of 256 (v6e/v7x) or 128: unmasked lane-dense
    #    stores instead of vst.msk.
    g_max = max(1, min(LANE_CAP // max(M, 1),
                       max(1, OUT_LANE_CAP // max(Wo, 1)),
                       max(1, R // 8)))
    divisors = [g for g in range(1, min(g_max, R) + 1) if R % g == 0]
    G = divisors[-1]
    lane_targets = (256, 128) if OUT_LANE_CAP >= 256 else (128,)
    for t in lane_targets:
        cand = [g for g in divisors if (g * Wo) % t == 0]
        if cand:
            G = cand[-1]
            break
    R2, GM, GWo = R // G, G * M, G * Wo

    # Pure reshape of contiguous NCHW -- no transpose, no extra HBM traffic.
    xv = x.reshape(R2, GM)

    # Constant 0/1 selection matrix: output column c = (g, wo) sums input
    # lanes f = g*kh*W + r*W + wo*kw + k over r < kh, k < kw.  bf16 is exact
    # for 0/1 and halves P's DMA + VMEM footprint.
    f = np.arange(GM)[:, None]
    c = np.arange(GWo)[None, :]
    P_np = ((f // M == c // Wo) & ((f % W) // kw == c % Wo)).astype(np.float32)
    P = jnp.asarray(P_np, dtype=jnp.bfloat16)

    # Rows per grid step: dtype-aware sublane alignment, generation-specific
    # per-step HBM target, capped so double-buffered blocks + kernel-body
    # temporaries stay inside the per-generation VMEM budget.
    itemsize = jnp.dtype(x.dtype).itemsize
    row_align = 8 * max(1, 4 // itemsize)          # 8 f32, 16 bf16, 32 int8/fp8
    per_row_hbm = GM * itemsize
    per_row_vmem = 2 * GM * itemsize + 2 * GWo * 4 + 20 * GM + 8 * GWo  # generous
    TR = min(STEP_BYTES // per_row_hbm, VMEM_BUDGET // per_row_vmem)
    TR = max(row_align, (TR // row_align) * row_align)
    R2_pad = ((R2 + row_align - 1) // row_align) * row_align
    TR = min(TR, R2_pad)
    if gen == "v7" and pl.cdiv(R2, TR) < 2 and R2 >= 2 * row_align:
        # v7x has 2 TensorCores; the "parallel" axis needs >=2 steps to shard.
        TR = (((R2 + 1) // 2 + row_align - 1) // row_align) * row_align
    grid = (pl.cdiv(R2, TR),)

    passes = 3
    cost = pl.CostEstimate(
        flops=2 * passes * R2 * GM * GWo,
        transcendentals=R2 * GWo,
        bytes_accessed=R2 * GM * itemsize + R2 * GWo * itemsize + GM * GWo * 2)

    vmem_need = (2 * TR * GM * itemsize + 2 * TR * GWo * itemsize
                 + 2 * GM * GWo * 2 + TR * (20 * GM + 8 * GWo))
    vmem_limit = int(min(VMEM_CAP, max(32 << 20, 2 * vmem_need)))

    out2d = pl.pallas_call(
        _norm_pool_kernel,
        out_shape=jax.ShapeDtypeStruct((R2, GWo), x.dtype),
        grid=grid,
        in_specs=[
            pl.BlockSpec((TR, GM), lambda i: (i, 0)),
            pl.BlockSpec((GM, GWo), lambda i: (0, 0)),  # constant block: fetched once
        ],
        out_specs=pl.BlockSpec((TR, GWo), lambda i: (i, 0)),
        compiler_params=pltpu.CompilerParams(
            dimension_semantics=("parallel",),
            vmem_limit_bytes=vmem_limit),
        cost_estimate=cost,
    )(xv, P)

    # Pure reshape back to the pooled NCHW layout.
    return out2d.reshape(B, C, Ho, Wo)


def _reference(x, kernel_size):
    # pure-JAX reference mirroring the PyTorch formula
    kh, kw = kernel_size
    B, C, H, W = x.shape
    Ho, Wo = H // kh, W // kw
    x2 = (x * x).reshape(B, C, Ho, kh, Wo, kw)
    avg = x2.mean(axis=(3, 5))
    return math.sqrt(kh * kw) * jnp.sqrt(avg)


if __name__ == "__main__":
    key = jax.random.PRNGKey(0)
    x = jax.random.normal(key, (2, 4, 16, 16), dtype=jnp.float32)  # NCHW

    out = norm_pooling_2d(x, kernel_size=(2, 2))
    out = jax.block_until_ready(out)

    ref = _reference(x, (2, 2))
    assert out.shape == (2, 4, 8, 8)
    assert jnp.allclose(out, ref, atol=1e-5, rtol=1e-5), float(
        jnp.max(jnp.abs(out - ref)))

    print("KERNEL_OK")
</pallas_src>

<mosaic_0001>
module attributes {stable_mosaic.version = 11 : i64} {
  func.func @_norm_pool_kernel(%arg0: i32, %arg1: memref<8x256xf32, #tpu.memory_space<vmem>>, %arg2: memref<256x64xbf16, #tpu.memory_space<vmem>>, %arg3: memref<8x64xf32, #tpu.memory_space<vmem>>) attributes {dimension_semantics = [#tpu.dimension_semantics<parallel>], iteration_bounds = array<i64: 1>, scalar_prefetch = 0 : i64, scratch_operands = 0 : i64, tpu.core_type = #tpu.core_type<tc>, window_params = [{transform_indices = @transform_0, window_bounds = array<i64: 8, 256>}, {pipeline_mode = #tpu.pipeline_mode<synchronous>, transform_indices = @transform_1, window_bounds = array<i64: 256, 64>}, {transform_indices = @transform_2, window_bounds = array<i64: 8, 64>}]} {
    %c0 = arith.constant 0 : index
    %c0_0 = arith.constant 0 : index
    %0 = vector.load %arg1[%c0, %c0_0] : memref<8x256xf32, #tpu.memory_space<vmem>>, vector<8x256xf32>
    %1 = arith.mulf %0, %0 : vector<8x256xf32>
    %2 = arith.truncf %1 : vector<8x256xf32> to vector<8x256xbf16>
    %3 = arith.extf %2 : vector<8x256xbf16> to vector<8x256xf32>
    %4 = arith.subf %1, %3 : vector<8x256xf32>
    %5 = arith.truncf %4 : vector<8x256xf32> to vector<8x256xbf16>
    %6 = arith.extf %5 : vector<8x256xbf16> to vector<8x256xf32>
    %7 = arith.subf %4, %6 : vector<8x256xf32>
    %8 = arith.truncf %7 : vector<8x256xf32> to vector<8x256xbf16>
    %c0_1 = arith.constant 0 : index
    %c0_2 = arith.constant 0 : index
    %9 = vector.load %arg2[%c0_1, %c0_2] : memref<256x64xbf16, #tpu.memory_space<vmem>>, vector<256x64xbf16>
    %cst = arith.constant dense<0.000000e+00> : vector<8x64xf32>
    %10 = tpu.matmul %2, %9, %cst {dimension_numbers = #tpu.dot_dimension_numbers<[1], [0], [0], [1], [0, 0, 1, 1], [], []>} : vector<8x256xbf16>, vector<256x64xbf16>, vector<8x64xf32> -> vector<8x64xf32>
    %cst_3 = arith.constant dense<0.000000e+00> : vector<8x64xf32>
    %11 = tpu.matmul %5, %9, %cst_3 {dimension_numbers = #tpu.dot_dimension_numbers<[1], [0], [0], [1], [0, 0, 1, 1], [], []>} : vector<8x256xbf16>, vector<256x64xbf16>, vector<8x64xf32> -> vector<8x64xf32>
    %12 = arith.addf %10, %11 : vector<8x64xf32>
    %cst_4 = arith.constant dense<0.000000e+00> : vector<8x64xf32>
    %13 = tpu.matmul %8, %9, %cst_4 {dimension_numbers = #tpu.dot_dimension_numbers<[1], [0], [0], [1], [0, 0, 1, 1], [], []>} : vector<8x256xbf16>, vector<256x64xbf16>, vector<8x64xf32> -> vector<8x64xf32>
    %14 = arith.addf %12, %13 : vector<8x64xf32>
    %cst_5 = arith.constant 0.000000e+00 : f32
    %15 = vector.broadcast %cst_5 : f32 to vector<8x64xf32>
    %16 = arith.maximumf %14, %15 : vector<8x64xf32>
    %17 = math.sqrt %16 : vector<8x64xf32>
    %c0_6 = arith.constant 0 : index
    %c0_7 = arith.constant 0 : index
    %18 = vector.load %arg3[%c0_6, %c0_7] : memref<8x64xf32, #tpu.memory_space<vmem>>, vector<8x64xf32>
    tpu.vector_store %arg3[%c0_6, %c0_7], %17 {strides = array<i32>} : memref<8x64xf32, #tpu.memory_space<vmem>>, vector<8x64xf32>,
    return
  }
  func.func @transform_0(%arg0: i32) -> (i32, i32) {
    %c0_i32 = arith.constant 0 : i32
    %c0_i32_0 = arith.constant 0 : i32
    return %arg0, %c0_i32 : i32, i32
  }
  func.func @transform_1(%arg0: i32) -> (i32, i32) {
    %c0_i32 = arith.constant 0 : i32
    %c0_i32_0 = arith.constant 0 : i32
    %c0_i32_1 = arith.constant 0 : i32
    return %c0_i32, %c0_i32_0 : i32, i32
  }
  func.func @transform_2(%arg0: i32) -> (i32, i32) {
    %c0_i32 = arith.constant 0 : i32
    %c0_i32_0 = arith.constant 0 : i32
    return %arg0, %c0_i32 : i32, i32
  }
}

</mosaic_0001>

<bundles_post_ra>
// kernel: norm_pooling_2d.1
= control target key start
LH: loop header
LB: loop body
LE: loop exit
PB: predicated region body
PF: predicated region fallthrough
CT: control target
= control target key end

     0   :  { %vm287_vm1 = vcmask 523264   ;;  %s485_s1 = inlined_call_operand.vmem [shape: bf16[256,64], index: 1, kind: input, shape index: {}]   ;;  %s486_s0 = inlined_call_operand.vmem [shape: f32[8,256], index: 0, kind: input, shape index: {}]   ;;  %s487_s2 = inlined_call_operand.vmem [shape: f32[8,64], index: 2, kind: output, shape index: {}]  }
   0x1   :  { %v411_v0 = vld [vmem:[%s485_s1 + $0x40] sm:$0xff]   ;;  %v423_v2 = vld [vmem:[%s485_s1 + $0x48] sm:$0xff]   ;;  %v379_v4 = vld [vmem:[%s485_s1 + $0x50] sm:$0xff]  }
   0x2   :  { %v416_v1 = vld [vmem:[%s485_s1] sm:$0xff]   ;;  %309 = vmatprep.subr.bf16.mxu0 %v411_v0  ;;  %331 = vmatprep.subr.bf16.mxu1 %v411_v0  ;;  %v430_v3 = vld [vmem:[%s485_s1 + $0x8] sm:$0xff]   ;;  %v380_v5 = vld [vmem:[%s485_s1 + $0x10] sm:$0xff]  }
   0x3   :  { %310 = vmatpush3.bf16.msra.mxu0 %v416_v1  ;;  %332 = vmatpush3.bf16.msra.mxu1 %v416_v1  ;;  %v381_v6 = vld [vmem:[%s485_s1 + $0x58] sm:$0xff]   ;;  %v383_v8 = vld [vmem:[%s485_s1 + $0x60] sm:$0xff]   ;;  %v385_v10 = vld [vmem:[%s485_s1 + $0x68] sm:$0xff]  }
   0x4   :  { %311 = vmatprep.subr.bf16.mxu0 %v423_v2  ;;  %333 = vmatprep.subr.bf16.mxu1 %v423_v2  ;;  %v382_v7 = vld [vmem:[%s485_s1 + $0x18] sm:$0xff]   ;;  %v384_v9 = vld [vmem:[%s485_s1 + $0x20] sm:$0xff]   ;;  %v13_v12 = vld [vmem:[%s486_s0 + $0x8] sm:$0xff] }
   0x5   :  { %v12_v11 = vld [vmem:[%s486_s0] sm:$0xff]  ;;  %v15_v13 = vmul.f32 %v13_v12, %v13_v12  ;;  %v386_v15 = vld [vmem:[%s485_s1 + $0x28] sm:$0xff]   ;;  %v387_v18 = vld [vmem:[%s485_s1 + $0x70] sm:$0xff]  }
   0x6   :  { %v14_v14 = vmul.f32 %v12_v11, %v12_v11  ;;  %v388_v21 = vld [vmem:[%s485_s1 + $0x30] sm:$0xff]   ;;  %v389_v23 = vld [vmem:[%s485_s1 + $0x78] sm:$0xff]  }
   0x7   :  { %312 = vmatpush3.bf16.msra.mxu0 %v430_v3  ;;  %334 = vmatpush3.bf16.msra.mxu1 %v430_v3  ;;  %v17_v16 = vpack.c.bf16 %v15_v13, %v15_v13  ;;  %v390_v26 = vld [vmem:[%s485_s1 + $0x38] sm:$0xff]  }
   0x8   :  { %313 = vmatprep.subr.bf16.mxu0 %v379_v4  ;;  %335 = vmatprep.subr.bf16.mxu1 %v379_v4  ;;  %v16_v17 = vpack.c.bf16 %v14_v14, %v14_v14 }
   0x9   :  { %v19_v19 = vunpack.c.l.bf16 %v17_v16  ;;  %230 = vmatprep.mubr.bf16.mxu1 %v17_v16 }
   0xa   :  { %v18_v20 = vunpack.c.l.bf16 %v16_v17 }
   0xb   :  { %314 = vmatpush3.bf16.msra.mxu0 %v380_v5  ;;  %336 = vmatpush3.bf16.msra.mxu1 %v380_v5  ;;  %v21_v22 = vsub.f32 %v15_v13, %v19_v19 }
   0xc   :  { %315 = vmatprep.subr.bf16.mxu0 %v381_v6  ;;  %337 = vmatprep.subr.bf16.mxu1 %v381_v6  ;;  %v20_v25 = vsub.f32 %v14_v14, %v18_v20 }
   0xd   :  { %v23_v24 = vpack.c.bf16 %v21_v22, %v21_v22 }
   0xe   :  { %v22_v29 = vpack.c.bf16 %v20_v25, %v20_v25 }
   0xf   :  { %316 = vmatpush3.bf16.msra.mxu0 %v382_v7  ;;  %338 = vmatpush3.bf16.msra.mxu1 %v382_v7  ;;  %v25_v27 = vunpack.c.l.bf16 %v23_v24 }
  0x10   :  { %317 = vmatprep.subr.bf16.mxu0 %v383_v8  ;;  %339 = vmatprep.subr.bf16.mxu1 %v383_v8  ;;  %v24_v31 = vunpack.c.l.bf16 %v22_v29 }
  0x11   :  { %190 = vmatprep.mubr.bf16.mxu0 %v23_v24  ;;  %v27_v28 = vsub.f32 %v21_v22, %v25_v27 }
  0x12   :  { %v26_v32 = vsub.f32 %v20_v25, %v24_v31 }
  0x13   :  { %318 = vmatpush3.bf16.msra.mxu0 %v384_v9  ;;  %340 = vmatpush3.bf16.msra.mxu1 %v384_v9  ;;  %v29_v30 = vpack.c.bf16 %v27_v28, %v27_v28 }
  0x14   :  { %319 = vmatprep.subr.bf16.mxu0 %v385_v10  ;;  %341 = vmatprep.subr.bf16.mxu1 %v385_v10  ;;  %v28_v33 = vpack.c.bf16 %v26_v32, %v26_v32 }
  0x17   :  { %320 = vmatpush3.bf16.msra.mxu0 %v386_v15  ;;  %342 = vmatpush3.bf16.msra.mxu1 %v386_v15 }
  0x18   :  { %321 = vmatprep.subr.bf16.mxu0 %v387_v18  ;;  %343 = vmatprep.subr.bf16.mxu1 %v387_v18 }
  0x1b   :  { %322 = vmatpush3.bf16.msra.mxu0 %v388_v21  ;;  %344 = vmatpush3.bf16.msra.mxu1 %v388_v21 }
  0x1c   :  { %323 = vmatprep.subr.bf16.mxu0 %v389_v23  ;;  %345 = vmatprep.subr.bf16.mxu1 %v389_v23 }
  0x1f   :  { %324 = vmatpush3.bf16.msra.mxu0 %v390_v26  ;;  %346 = vmatpush3.bf16.msra.mxu1 %v390_v26 }
  0x20   :  { %353 = vmatprep.subr.bf16.mxu0 %v411_v0 }
  0x22   :  { %191 = vmatmul.mubr.bf16.vlgmr.msra.gmra.mrb[0].mxu0 %v22_v29  ;;  %231 = vmatmul.mubr.bf16.vlgmr.msra.gmra.mrb[0].mxu1 %v16_v17 }
  0x23   :  { %354 = vmatpush3.bf16.msra.mxu0 %v416_v1  ;;  %270 = vmatprep.mubr.bf16.mxu0 %v29_v30 }
  0x24   :  { %355 = vmatprep.subr.bf16.mxu0 %v423_v2 }
  0x27   :  { %356 = vmatpush3.bf16.msra.mxu0 %v430_v3 }
  0x28   :  { %357 = vmatprep.subr.bf16.mxu0 %v379_v4 }
  0x2b   :  { %358 = vmatpush3.bf16.msra.mxu0 %v380_v5 }
  0x2c   :  { %359 = vmatprep.subr.bf16.mxu0 %v381_v6 }
  0x2f   :  { %360 = vmatpush3.bf16.msra.mxu0 %v382_v7 }
  0x30   :  { %361 = vmatprep.subr.bf16.mxu0 %v383_v8 }
  0x33   :  { %362 = vmatpush3.bf16.msra.mxu0 %v384_v9 }
  0x34   :  { %363 = vmatprep.subr.bf16.mxu0 %v385_v10 }
  0x37   :  { %364 = vmatpush3.bf16.msra.mxu0 %v386_v15 }
  0x38   :  { %365 = vmatprep.subr.bf16.mxu0 %v387_v18 }
  0x3b   :  { %366 = vmatpush3.bf16.msra.mxu0 %v388_v21 }
  0x3c   :  { %367 = vmatprep.subr.bf16.mxu0 %v389_v23 }
  0x3f   :  { %368 = vmatpush3.bf16.msra.mxu0 %v390_v26 }
  0x42   :  { %271 = vmatmul.mubr.bf16.vlgmr.msra.gmra.mrb[4].mxu0 %v28_v33 }
  0xf5   :  { %v325_v34 = vpop.f32.mrb[0].mxu0  ;;  %v347_v35 = vpop.f32.mrb[0].mxu1 }
  0xf6   :  { %v326_v36 = vpop.f32.mrb[1].mxu0  ;;  %v348_v37 = vpop.f32.mrb[1].mxu1 }
  0xf7   :  { %v327_v38 = vadd.f32 %v326_v36, %v325_v34  ;;  %v349_v39 = vadd.f32 %v348_v37, %v347_v35  ;;  %v328_v40 = vpop.f32.mrb[2].mxu0  ;;  %v350_v41 = vpop.f32.mrb[2].mxu1 }
  0xf8   :  { %v329_v42 = vpop.f32.mrb[3].mxu0  ;;  %v351_v43 = vpop.f32.mrb[3].mxu1 }
  0xf9   :  { %v233_v44 = vadd.f32 %v349_v39, %v327_v38 }
 0x115   :  { %v369_v45 = vpop.f32.mrb[4].mxu0 }
 0x116   :  { %v370_v46 = vpop.f32.mrb[5].mxu0 }
 0x117   :  { %v371_v47 = vadd.f32 %v370_v46, %v369_v45  ;;  %v372_v48 = vpop.f32.mrb[6].mxu0 }
 0x118   :  { %v373_v49 = vpop.f32.mrb[7].mxu0 }
 0x119   :  { %v278_v50 = vadd.f32 %v371_v47, %v233_v44 }
 0x11b   :  { %v279_v51 = vmax.f32 %v278_v50, 0.0 }
 0x11d   :  { %391 = vrsqrt.f32 %v279_v51  ;;  %vm282_vm0 = vcmp.eq.f32.partialorder %v279_v51, inf  ;;  %v285_v54 = vand.u32 2147483648, %v279_v51  ;;  %vm284_vm2 = vcmp.eq.f32.partialorder %v279_v51, 0.0 }
 0x127   :  { %v392_v52 = vpop.eup %391 }
 0x128   :  { %v281_v53 = vmul.f32 %v392_v52, %v279_v51 }
 0x12a   :  { %v283_v55 = vsel %vm282_vm0, %v279_v51, %v281_v53 }
 0x12b   :  { %v286_v56 = vsel %vm284_vm2, %v285_v54, %v283_v55 }
 0x12c   :  { %288 = vst.msk [vmem:[%s487_s2] sm:$0xff] %vm287_vm1, %v286_v56 }

</bundles_post_ra>
